<compile_context>
chip_gen: v6e
topology: v6e:2x2x1
jax: 0.10.0
libtpu: 0.0.40
codegen_flags: <defaults>
</compile_context>

<pallas_src>
import jax
import jax.numpy as jnp
from jax import lax
from jax.experimental import pallas as pl
from jax.experimental.pallas import tpu as pltpu


def _make_kernel(*, hw: int, pq_tile: int):
    """Channel-reduce-then-gather kernel for fixed static sizes."""

    def kernel(x_ref, idx_ref, scale_ref, o_ref, sums_ref):
        # x_ref    : VMEM (1, HW, C)      -- per-image slab (auto-pipelined)
        # idx_ref  : VMEM (1, pq_tile)    -- flat spatial gather indices (chunk)
        # scale_ref: SMEM (1,) float32    -- conv weight / C
        # o_ref    : VMEM (1, 1, pq_tile) -- lane-dense output block
        # sums_ref : VMEM (HW, 1) float32 -- per-image channel sums (scratch)
        j = pl.program_id(1)

        # (1) Channel reduction, once per image (first PQ tile of that image).
        #     f32 accumulation; result persists in scratch across PQ tiles.
        @pl.when(j == 0)
        def _reduce_channels():
            x_im = x_ref[0]                                         # (HW, C)
            sums_ref[...] = jnp.sum(
                x_im, axis=-1, keepdims=True, dtype=jnp.float32)    # (HW, 1)

        # (2) Gather this PQ chunk with a one-hot matmul on the MXU.
        #     onehot[k, q] = (k == idx[q]); out = sums^T @ onehot is exactly
        #     out[q] = sums[idx[q]], produced lane-dense in one shot.
        row_ids = lax.broadcasted_iota(jnp.int32, (hw, pq_tile), 0)
        onehot = (row_ids == idx_ref[...]).astype(jnp.float32)      # (HW, pq)
        gathered = lax.dot_general(                                  # (1, pq)
            sums_ref[...], onehot,
            dimension_numbers=(((0,), (0,)), ((), ())),
            preferred_element_type=jnp.float32)

        # (3) Fused (1/C) * conv_weight scale, lane-dense store.
        o_ref[0] = (gathered * scale_ref[0]).astype(o_ref.dtype)

    return kernel


def testnet_mul_forward(x, ttds_x, ttds_y, w, *, pq_tile=512, core_parallel=False):
    """x: (N, H, W, C); ttds_x/ttds_y: (P, Q) int; w: scalar 1x1-conv weight.

    Returns (N, 1, P, Q), matching the PyTorch module's output layout.
    Set core_parallel=True on v7x to shard the image axis across both
    TensorCores (pltpu.CORE_PARALLEL).
    """
    N, H, W_, C = x.shape
    P, Q = ttds_x.shape
    HW = H * W_
    PQ = P * Q

    # Lane-dense tiling of the gathered P*Q axis (multiple of 128).
    pq_tile = max(128, (int(pq_tile) // 128) * 128)
    pq_tile = min(pq_tile, ((PQ + 127) // 128) * 128)
    PQ_pad = ((PQ + pq_tile - 1) // pq_tile) * pq_tile
    num_pq_tiles = PQ_pad // pq_tile

    # Flat spatial indices into the reduced (H*W,) slab.  Indices are clamped
    # like JAX gather semantics (PyTorch would raise on out-of-range instead).
    tx = jnp.clip(ttds_x.astype(jnp.int32), 0, H - 1)
    ty = jnp.clip(ttds_y.astype(jnp.int32), 0, W_ - 1)
    idx = (tx * W_ + ty).reshape(-1)                                # (P*Q,)
    if PQ_pad > PQ:
        idx = jnp.pad(idx, (0, PQ_pad - PQ))                        # pad -> pixel 0
    idx = idx.reshape(1, PQ_pad)

    x3 = x.reshape(N, HW, C)                                        # free collapse
    scale = (jnp.asarray(w, jnp.float32) / jnp.float32(C)).reshape(1)

    kernel = _make_kernel(hw=HW, pq_tile=pq_tile)

    if core_parallel:
        dims = (pltpu.CORE_PARALLEL, pltpu.ARBITRARY)   # real 2-TC split on v7x
    else:
        dims = ("parallel", "arbitrary")                # single-TC v5e/v6e default

    out = pl.pallas_call(
        kernel,
        out_shape=jax.ShapeDtypeStruct((N, 1, PQ_pad), x.dtype),
        grid_spec=pltpu.PrefetchScalarGridSpec(
            num_scalar_prefetch=0,
            grid=(N, num_pq_tiles),
            in_specs=[
                # Dense per-image slab, auto-pipelined; block index ignores j
                # so the slab is not re-fetched across PQ tiles of one image.
                pl.BlockSpec((1, HW, C), lambda n, j: (n, 0, 0)),
                # Gather-index chunk (tiny, lane-dense int32).
                pl.BlockSpec((1, pq_tile), lambda n, j: (0, j)),
                # Folded scalar scale = w / C.
                pl.BlockSpec(memory_space=pltpu.MemorySpace.SMEM),
            ],
            out_specs=pl.BlockSpec((1, 1, pq_tile), lambda n, j: (n, 0, j)),
            scratch_shapes=[pltpu.VMEM((HW, 1), jnp.float32)],
        ),
        compiler_params=pltpu.CompilerParams(dimension_semantics=dims),
    )(x3, idx, scale)

    # Back to PyTorch NCHW output convention: (N, 1, P, Q).
    return out[:, :, :PQ].reshape(N, 1, P, Q)


if __name__ == "__main__":
    key = jax.random.PRNGKey(0)
    k1, k2, k3, k4 = jax.random.split(key, 4)

    # Small shapes consistent with the module's forward.
    N, H, W, C = 2, 16, 16, 8
    P, Q = 16, 16

    x = jax.random.normal(k1, (N, H, W, C), dtype=jnp.float32)
    ttds_x = jax.random.randint(k2, (P, Q), 0, H, dtype=jnp.int32)
    ttds_y = jax.random.randint(k3, (P, Q), 0, W, dtype=jnp.int32)
    # Conv2d(1, 1, 1, bias=False) weight (1,1,1,1) collapses to one scalar.
    w = jax.random.normal(k4, (), dtype=jnp.float32)

    # pq_tile=128 -> grid (N=2, J=2): exercises the per-image channel-reduce
    # reuse across PQ tiles, image-slab streaming, and idx/output tiling.
    out = jax.block_until_ready(
        testnet_mul_forward(x, ttds_x, ttds_y, w, pq_tile=128)
    )

    # Pure-JAX reference for correctness.
    ref = (
        x[:, ttds_x, ttds_y, :]
        .transpose(0, 3, 1, 2)
        .mean(axis=1, keepdims=True)
        * w
    )
    assert out.shape == (N, 1, P, Q), out.shape
    assert jnp.allclose(out, ref, atol=1e-5, rtol=1e-5), "mismatch vs reference"
    print("KERNEL_OK")
</pallas_src>

<mosaic_0001>
module attributes {stable_mosaic.version = 11 : i64} {
  func.func @kernel(%arg0: i32, %arg1: i32, %arg2: memref<1x256x8xf32, #tpu.memory_space<vmem>>, %arg3: memref<1x128xi32, #tpu.memory_space<vmem>>, %arg4: memref<1xf32, #tpu.memory_space<smem>>, %arg5: memref<1x1x128xf32, #tpu.memory_space<vmem>>, %arg6: memref<256x1xf32, #tpu.memory_space<vmem>>) attributes {dimension_semantics = [#tpu.dimension_semantics<parallel>, #tpu.dimension_semantics<arbitrary>], iteration_bounds = array<i64: 2, 2>, scalar_prefetch = 0 : i64, scratch_operands = 1 : i64, tpu.core_type = #tpu.core_type<tc>, window_params = [{transform_indices = @transform_0, window_bounds = array<i64: 1, 256, 8>}, {transform_indices = @transform_1, window_bounds = array<i64: 1, 128>}, {transform_indices = @transform_2, window_bounds = array<i64: 1>}, {transform_indices = @transform_3, window_bounds = array<i64: 1, 1, 128>}]} {
    %c0_i32 = arith.constant 0 : i32
    %0 = arith.cmpi eq, %arg1, %c0_i32 : i32
    %1 = arith.extui %0 : i1 to i32
    %c0_i32_0 = arith.constant 0 : i32
    %2 = arith.cmpi ne, %1, %c0_i32_0 : i32
    scf.if %2 {
      %c0_8 = arith.constant 0 : index
      %c0_9 = arith.constant 0 : index
      %c0_10 = arith.constant 0 : index
      %17 = vector.load %arg2[%c0_8, %c0_9, %c0_10] : memref<1x256x8xf32, #tpu.memory_space<vmem>>, vector<1x256x8xf32>
      %18 = vector.shape_cast %17 : vector<1x256x8xf32> to vector<256x8xf32>
      %cst_11 = arith.constant dense<0.000000e+00> : vector<256xf32>
      %19 = vector.multi_reduction <add>, %18, %cst_11 [1] : vector<256x8xf32> to vector<256xf32>
      %20 = vector.shape_cast %19 : vector<256xf32> to vector<256x1xf32>
      %c0_12 = arith.constant 0 : index
      %c0_13 = arith.constant 0 : index
      %21 = vector.load %arg6[%c0_12, %c0_13] : memref<256x1xf32, #tpu.memory_space<vmem>>, vector<256x1xf32>
      tpu.vector_store %arg6[%c0_12, %c0_13], %20 {strides = array<i32>} : memref<256x1xf32, #tpu.memory_space<vmem>>, vector<256x1xf32>,
    } else {
    }
    %3 = tpu.iota {dimensions = array<i32: 0>} : vector<256x128xi32>
    %c0 = arith.constant 0 : index
    %c0_1 = arith.constant 0 : index
    %4 = vector.load %arg3[%c0, %c0_1] : memref<1x128xi32, #tpu.memory_space<vmem>>, vector<1x128xi32>
    %5 = vector.broadcast %4 : vector<1x128xi32> to vector<256x128xi32>
    %6 = arith.cmpi eq, %3, %5 : vector<256x128xi32>
    %7 = arith.extui %6 : vector<256x128xi1> to vector<256x128xi32>
    %8 = arith.sitofp %7 : vector<256x128xi32> to vector<256x128xf32>
    %c0_2 = arith.constant 0 : index
    %c0_3 = arith.constant 0 : index
    %9 = vector.load %arg6[%c0_2, %c0_3] : memref<256x1xf32, #tpu.memory_space<vmem>>, vector<256x1xf32>
    %cst = arith.constant dense<0.000000e+00> : vector<1x128xf32>
    %10 = tpu.matmul %9, %8, %cst {dimension_numbers = #tpu.dot_dimension_numbers<[0], [0], [1], [1], [0, 1, 1, 1], [], []>} : vector<256x1xf32>, vector<256x128xf32>, vector<1x128xf32> -> vector<1x128xf32>
    %c0_4 = arith.constant 0 : index
    %11 = memref.load %arg4[%c0_4] : memref<1xf32, #tpu.memory_space<smem>>
    %12 = vector.broadcast %11 : f32 to vector<1x128xf32>
    %13 = arith.mulf %10, %12 : vector<1x128xf32>
    %c0_5 = arith.constant 0 : index
    %c0_6 = arith.constant 0 : index
    %c0_7 = arith.constant 0 : index
    %14 = vector.load %arg5[%c0_5, %c0_6, %c0_7] : memref<1x1x128xf32, #tpu.memory_space<vmem>>, vector<1x1x128xf32>
    %15 = vector.shape_cast %14 : vector<1x1x128xf32> to vector<1x128xf32>
    %16 = vector.shape_cast %13 : vector<1x128xf32> to vector<1x1x128xf32>
    tpu.vector_store %arg5[%c0_5, %c0_6, %c0_7], %16 {strides = array<i32>} : memref<1x1x128xf32, #tpu.memory_space<vmem>>, vector<1x1x128xf32>,
    return
  }
  func.func @transform_0(%arg0: i32, %arg1: i32) -> (i32, i32, i32) {
    %c0_i32 = arith.constant 0 : i32
    %c0_i32_0 = arith.constant 0 : i32
    %c0_i32_1 = arith.constant 0 : i32
    return %arg0, %c0_i32, %c0_i32_0 : i32, i32, i32
  }
  func.func @transform_1(%arg0: i32, %arg1: i32) -> (i32, i32) {
    %c0_i32 = arith.constant 0 : i32
    %c0_i32_0 = arith.constant 0 : i32
    return %c0_i32, %arg1 : i32, i32
  }
  func.func @transform_2(%arg0: i32, %arg1: i32) -> i32 {
    %c0_i32 = arith.constant 0 : i32
    %c0_i32_0 = arith.constant 0 : i32
    return %c0_i32 : i32
  }
  func.func @transform_3(%arg0: i32, %arg1: i32) -> (i32, i32, i32) {
    %c0_i32 = arith.constant 0 : i32
    %c0_i32_0 = arith.constant 0 : i32
    return %arg0, %c0_i32, %arg1 : i32, i32, i32
  }
}

</mosaic_0001>

<bundles_post_ra>
// kernel: tpu_custom_call.1
= control target key start
LH: loop header
LB: loop body
LE: loop exit
PB: predicated region body
PF: predicated region fallthrough
CT: control target
= control target key end

     0   :  { %s1442_s0 = inlined_call_operand.vmem [shape: f32[2,256,8], index: 0, kind: input, shape index: {}]   ;;  %s1443_s1 = inlined_call_operand.vmem [shape: s32[1,256], index: 1, kind: input, shape index: {}]   ;;  %s1444_s2 = inlined_call_operand.<no memory space> [shape: f32[1], index: 2, kind: input, shape index: {}]   ;;  %s1445_s3 = inlined_call_operand.hbm [shape: f32[2,1,256], index: 3, kind: output, shape index: {}]  }
   0x1   :  { %8 = sst [smem:[#allocation3]] %s1444_s2 }
   0x2   :  { %9 = vsyncpa [#allocation5], 0 }
   0x3   :  { %11 = vsyncpa [#allocation5 + $0x1], 0  ;;  %s1100_s14 = smov 0   ;;  %s1102_s15 = smov 0  }
   0x4   :  { %s1104_s16 = smov 0   ;;  %s1106_s17 = smov 0  }
   0x5   :  { %s1108_s18 = smov 0   ;;  %s1110_s19 = smov 0  }
   0x6   :  { %s1112_s20 = smov 0   ;;  %s1114_s21 = smov 0  }
   0x7 LB: > { %s759_s2 = sadd.s32 4294967295, %s1073_s21   ;;  %s760_s22 = sadd.s32 4294967294, %s1073_s21   ;;  %s1073_s21 = sphi %s1114_s21, %s17_s21   ;;  %s1069_s20 = sphi %s1112_s20, %s1454_s20   ;;  %s1065_s19 = sphi %s1110_s19, %s1453_s19   ;;  %s1061_s18 = sphi %s1108_s18, %s1452_s18   ;;  %s1057_s17 = sphi %s1106_s17, %s1451_s17   ;;  %s1053_s16 = sphi %s1104_s16, %s1450_s16   ;;  %s1049_s15 = sphi %s1102_s15, %s1449_s15   ;;  %s1045_s14 = sphi %s1100_s14, %s1448_s14  }
   0x8   : > { %s26_s23 = sadd.s32 1, %s1065_s19  ;;  %s29_s24 = sadd.s32 1, %s1069_s20 }
   0x9   : > { %p27_p0 = scmp.ge.s32.totalorder %s26_s23, 2  ;;  %p121_p1 = scmp.ne.s32.totalorder %s1053_s16, %s1049_s15 }
   0xa   : > { %p122_p2 = scmp.eq.s32.totalorder %s759_s2, 3  ;;  %p127_p5 = scmp.ne.s32.totalorder %s1049_s15, %s1045_s14 }
   0xb   : > { %s1456_s23 = smov (%p27_p0, %s26_s23), 0  ;;  %s1458_s24 = smov (!%p27_p0, %s29_s24), %s1069_s20 }
   0xc   : > { %s107_s25 = ssub.s32 %s1065_s19, %s1456_s23  ;;  %p1151_p3 = por %p122_p2, %p121_p1 }
   0xd   : > { %p31_p4 = scmp.ge.s32.totalorder %s1458_s24, 2  ;;  %p128_p6 = scmp.eq.s32.totalorder %s760_s22, 3 }
   0xe   : > { %p763_p7 = scmp.ge.s32.totalorder %s1073_s21, 1  ;;  %p163_p9 = scmp.lt.s32.totalorder %s1073_s21, 5 }
   0xf   : > { %s1460_s24 = smov (%p31_p4, %s1458_s24), 0  ;;  %p1160_p8 = por %p128_p6, %p127_p5 }
  0x10   : > { %s106_s28 = ssub.s32 %s1069_s20, %s1460_s24  ;;  %s111_s29 = sadd.s32 1, %s1053_s16 }
  0x11   : > { %s108_s30 = sor.u32 %s107_s25, %s106_s28  ;;  %p164_p10 = pnand %p763_p7, %p163_p9 }
  0x12   : > { %p109_p11 = scmp.eq.s32.totalorder %s108_s30, 0  ;;  %s187_s5 = sand.u32 (!%p164_p10), 1, %s1049_s15  }
  0x13   : > { %167 = sbr.rel (%p164_p10) target bundleno = 576 (0x240), region = 32  ;;  %p189_p12 = scmp.lt.s32.totalorder (!%p164_p10), %s1061_s18, 1 }
  0x14   : > { %s1169_s4 = scalar_select %p109_p11, %s1053_s16, %s111_s29  }
  0x15   : > { %p194_p13 = scmp.lt.s32.totalorder (!%p164_p10), %s1057_s17, 1  ;;  %s1189_s22 = scalar_lea.vmem (!%p164_p10), [#allocation4], %s187_s5 }
  0x16   : > { %p766_p0 = scmp.ne.s32.totalorder (!%p164_p10), %s1057_s17, 0 }
  0x18   : > { %s190_s6 = scalar_select %p189_p12, %s1061_s18, 1 }
  0x19   : > { %s1176_s7 = scalar_select %p194_p13, %s1057_s17, 1 }
  0x1a   : > { %s836_s8 = sshll.u32 %s190_s6, 8  ;;  %200 = sbr.rel (%p766_p0) target bundleno = 232 (0xe8), region = 36 }
  0x1b   : > { %s1181_s11 = scalar_lea.vmem %s1442_s0, %s836_s8  ;;  %s196_s2 = scalar_lea.vmem %s1443_s1, %s1176_s7 }
  0x1f   : > { %v203_v0 = vld [vmem:[%s1181_s11 + $0x10] sm:$0xff]  ;;  %vm233_vm0 = vcmask 64512   ;;  %v201_v1 = vld [vmem:[%s1181_s11] sm:$0xff]  ;;  %v204_v2 = vld [vmem:[%s1181_s11 + $0x18] sm:$0xff]  ;;  %vm330_vm1 = vcmask 7168  }
  0x20   : > { %v240_v3 = vsel %vm233_vm0, %v203_v0, 0.0  ;;  %v234_v4 = vsel %vm233_vm0, %v201_v1, 0.0  ;;  %v202_v5 = vld [vmem:[%s1181_s11 + $0x8] sm:$0xff]  ;;  %v243_v6 = vsel %vm233_vm0, %v204_v2, 0.0  ;;  %v205_v9 = vld [vmem:[%s1181_s11 + $0x20] sm:$0xff]  ;;  %v208_v12 = vld [vmem:[%s1181_s11 + $0x38] sm:$0xff] }
  0x21   : > { %241 = vadd.xlane.f32.xlu1 %v240_v3  ;;  %235 = vadd.xlane.f32.xlu0 %v234_v4  ;;  %v237_v7 = vsel %vm233_vm0, %v202_v5, 0.0  ;;  %v206_v8 = vld [vmem:[%s1181_s11 + $0x28] sm:$0xff]  ;;  %v246_v11 = vsel %vm233_vm0, %v205_v9, 0.0  ;;  %v207_v13 = vld [vmem:[%s1181_s11 + $0x30] sm:$0xff]  ;;  %v255_v14 = vsel %vm233_vm0, %v208_v12, 0.0  ;;  %v209_v17 = vld [vmem:[%s1181_s11 + $0x40] sm:$0xff] }
  0x22   : > { %v249_v10 = vsel %vm233_vm0, %v206_v8, 0.0  ;;  %v252_v15 = vsel %vm233_vm0, %v207_v13, 0.0  ;;  %v210_v16 = vld [vmem:[%s1181_s11 + $0x48] sm:$0xff]  ;;  %v258_v19 = vsel %vm233_vm0, %v209_v17, 0.0  ;;  %v212_v20 = vld [vmem:[%s1181_s11 + $0x58] sm:$0xff]  ;;  %v211_v21 = vld [vmem:[%s1181_s11 + $0x50] sm:$0xff] }
  0x23   : > { %v261_v18 = vsel %vm233_vm0, %v210_v16, 0.0  ;;  %v267_v22 = vsel %vm233_vm0, %v212_v20, 0.0  ;;  %v264_v23 = vsel %vm233_vm0, %v211_v21, 0.0  ;;  %v214_v24 = vld [vmem:[%s1181_s11 + $0x68] sm:$0xff]  ;;  %v213_v25 = vld [vmem:[%s1181_s11 + $0x60] sm:$0xff]  ;;  %v216_v28 = vld [vmem:[%s1181_s11 + $0x78] sm:$0xff] }
  0x24   : > { %v273_v26 = vsel %vm233_vm0, %v214_v24, 0.0  ;;  %v270_v27 = vsel %vm233_vm0, %v213_v25, 0.0  ;;  %v215_v29 = vld [vmem:[%s1181_s11 + $0x70] sm:$0xff]  ;;  %v279_v30 = vsel %vm233_vm0, %v216_v28, 0.0  ;;  %v218_v32 = vld [vmem:[%s1181_s11 + $0x88] sm:$0xff]  ;;  %v217_v33 = vld [vmem:[%s1181_s11 + $0x80] sm:$0xff] }
  0x25   : > { %244 = vadd.xlane.f32.xlu1 %v243_v6  ;;  %238 = vadd.xlane.f32.xlu0 %v237_v7  ;;  %v276_v31 = vsel %vm233_vm0, %v215_v29, 0.0  ;;  %v285_v34 = vsel %vm233_vm0, %v218_v32, 0.0  ;;  %v282_v35 = vsel %vm233_vm0, %v217_v33, 0.0  ;;  %v220_v36 = vld [vmem:[%s1181_s11 + $0x98] sm:$0xff]  ;;  %v219_v37 = vld [vmem:[%s1181_s11 + $0x90] sm:$0xff]  ;;  %v222_v40 = vld [vmem:[%s1181_s11 + $0xa8] sm:$0xff] }
  0x26   : > { %v291_v38 = vsel %vm233_vm0, %v220_v36, 0.0  ;;  %v288_v39 = vsel %vm233_vm0, %v219_v37, 0.0  ;;  %v221_v41 = vld [vmem:[%s1181_s11 + $0xa0] sm:$0xff]  ;;  %v297_v42 = vsel %vm233_vm0, %v222_v40, 0.0  ;;  %v224_v44 = vld [vmem:[%s1181_s11 + $0xb8] sm:$0xff]  ;;  %v223_v45 = vld [vmem:[%s1181_s11 + $0xb0] sm:$0xff] }
  0x27   : > { %v294_v43 = vsel %vm233_vm0, %v221_v41, 0.0  ;;  %v303_v46 = vsel %vm233_vm0, %v224_v44, 0.0  ;;  %v300_v47 = vsel %vm233_vm0, %v223_v45, 0.0  ;;  %v226_v48 = vld [vmem:[%s1181_s11 + $0xc8] sm:$0xff]  ;;  %v225_v49 = vld [vmem:[%s1181_s11 + $0xc0] sm:$0xff]  ;;  %v228_v52 = vld [vmem:[%s1181_s11 + $0xd8] sm:$0xff] }
  0x28   : > { %v309_v50 = vsel %vm233_vm0, %v226_v48, 0.0  ;;  %v306_v51 = vsel %vm233_vm0, %v225_v49, 0.0  ;;  %v227_v53 = vld [vmem:[%s1181_s11 + $0xd0] sm:$0xff]  ;;  %v315_v54 = vsel %vm233_vm0, %v228_v52, 0.0  ;;  %v230_v56 = vld [vmem:[%s1181_s11 + $0xe8] sm:$0xff]  ;;  %v229_v57 = vld [vmem:[%s1181_s11 + $0xe0] sm:$0xff] }
  0x29   : > { %250 = vadd.xlane.f32.xlu1 %v249_v10  ;;  %247 = vadd.xlane.f32.xlu0 %v246_v11  ;;  %v312_v55 = vsel %vm233_vm0, %v227_v53, 0.0  ;;  %v321_v58 = vsel %vm233_vm0, %v230_v56, 0.0  ;;  %v318_v59 = vsel %vm233_vm0, %v229_v57, 0.0  ;;  %v232_v60 = vld [vmem:[%s1181_s11 + $0xf8] sm:$0xff]  ;;  %v231_v61 = vld [vmem:[%s1181_s11 + $0xf0] sm:$0xff] }
  0x2a   : > { %v327_v62 = vsel %vm233_vm0, %v232_v60, 0.0  ;;  %v324_v63 = vsel %vm233_vm0, %v231_v61, 0.0 }
  0x2d   : > { %256 = vadd.xlane.f32.xlu1 %v255_v14  ;;  %253 = vadd.xlane.f32.xlu0 %v252_v15 }
  0x31   : > { %262 = vadd.xlane.f32.xlu1 %v261_v18  ;;  %259 = vadd.xlane.f32.xlu0 %v258_v19 }
  0x35   : > { %268 = vadd.xlane.f32.xlu1 %v267_v22  ;;  %265 = vadd.xlane.f32.xlu0 %v264_v23 }
  0x39   : > { %274 = vadd.xlane.f32.xlu1 %v273_v26  ;;  %271 = vadd.xlane.f32.xlu0 %v270_v27 }
  0x3d   : > { %280 = vadd.xlane.f32.xlu1 %v279_v30  ;;  %277 = vadd.xlane.f32.xlu0 %v276_v31 }
  0x41   : > { %286 = vadd.xlane.f32.xlu1 %v285_v34  ;;  %283 = vadd.xlane.f32.xlu0 %v282_v35 }
  0x45   : > { %292 = vadd.xlane.f32.xlu1 %v291_v38  ;;  %289 = vadd.xlane.f32.xlu0 %v288_v39 }
  0x49   : > { %298 = vadd.xlane.f32.xlu1 %v297_v42  ;;  %295 = vadd.xlane.f32.xlu0 %v294_v43 }
  0x4d   : > { %304 = vadd.xlane.f32.xlu1 %v303_v46  ;;  %301 = vadd.xlane.f32.xlu0 %v300_v47 }
  0x51   : > { %310 = vadd.xlane.f32.xlu1 %v309_v50  ;;  %307 = vadd.xlane.f32.xlu0 %v306_v51 }
  0x55   : > { %316 = vadd.xlane.f32.xlu1 %v315_v54  ;;  %313 = vadd.xlane.f32.xlu0 %v312_v55 }
  0x59   : > { %322 = vadd.xlane.f32.xlu1 %v321_v58  ;;  %319 = vadd.xlane.f32.xlu0 %v318_v59 }
  0x5d   : > { %328 = vadd.xlane.f32.xlu1 %v327_v62  ;;  %325 = vadd.xlane.f32.xlu0 %v324_v63 }
  0xaa   : > { %v242_v0 = vpop.xlane.xlu1 %241  ;;  %v236_v1 = vpop.xlane.xlu0 %235 }
  0xab   : > { %333 = vst.msk [vmem:[#allocation2 + $0x10] sm:$0xff] %vm330_vm1, %v242_v0  ;;  %331 = vst.msk [vmem:[#allocation2] sm:$0xff] %vm330_vm1, %v236_v1 }
  0xae   : > { %v245_v2 = vpop.xlane.xlu1 %244  ;;  %v239_v3 = vpop.xlane.xlu0 %238 }
  0xaf   : > { %334 = vst.msk [vmem:[#allocation2 + $0x18] sm:$0xff] %vm330_vm1, %v245_v2  ;;  %332 = vst.msk [vmem:[#allocation2 + $0x8] sm:$0xff] %vm330_vm1, %v239_v3 }
  0xb2   : > { %v251_v4 = vpop.xlane.xlu1 %250  ;;  %v248_v5 = vpop.xlane.xlu0 %247 }
  0xb3   : > { %336 = vst.msk [vmem:[#allocation2 + $0x28] sm:$0xff] %vm330_vm1, %v251_v4  ;;  %335 = vst.msk [vmem:[#allocation2 + $0x20] sm:$0xff] %vm330_vm1, %v248_v5 }
  0xb6   : > { %v257_v6 = vpop.xlane.xlu1 %256  ;;  %v254_v7 = vpop.xlane.xlu0 %253 }
  0xb7   : > { %338 = vst.msk [vmem:[#allocation2 + $0x38] sm:$0xff] %vm330_vm1, %v257_v6  ;;  %337 = vst.msk [vmem:[#allocation2 + $0x30] sm:$0xff] %vm330_vm1, %v254_v7 }
  0xba   : > { %v263_v8 = vpop.xlane.xlu1 %262  ;;  %v260_v9 = vpop.xlane.xlu0 %259 }
  0xbb   : > { %340 = vst.msk [vmem:[#allocation2 + $0x48] sm:$0xff] %vm330_vm1, %v263_v8  ;;  %339 = vst.msk [vmem:[#allocation2 + $0x40] sm:$0xff] %vm330_vm1, %v260_v9 }
  0xbe   : > { %v269_v10 = vpop.xlane.xlu1 %268  ;;  %v266_v11 = vpop.xlane.xlu0 %265 }
  0xbf   : > { %342 = vst.msk [vmem:[#allocation2 + $0x58] sm:$0xff] %vm330_vm1, %v269_v10  ;;  %341 = vst.msk [vmem:[#allocation2 + $0x50] sm:$0xff] %vm330_vm1, %v266_v11 }
  0xc2   : > { %v275_v12 = vpop.xlane.xlu1 %274  ;;  %v272_v13 = vpop.xlane.xlu0 %271 }
  0xc3   : > { %344 = vst.msk [vmem:[#allocation2 + $0x68] sm:$0xff] %vm330_vm1, %v275_v12  ;;  %343 = vst.msk [vmem:[#allocation2 + $0x60] sm:$0xff] %vm330_vm1, %v272_v13 }
  0xc6   : > { %v281_v14 = vpop.xlane.xlu1 %280  ;;  %v278_v15 = vpop.xlane.xlu0 %277 }
  0xc7   : > { %346 = vst.msk [vmem:[#allocation2 + $0x78] sm:$0xff] %vm330_vm1, %v281_v14  ;;  %345 = vst.msk [vmem:[#allocation2 + $0x70] sm:$0xff] %vm330_vm1, %v278_v15 }
  0xca   : > { %v287_v16 = vpop.xlane.xlu1 %286  ;;  %v284_v17 = vpop.xlane.xlu0 %283 }
  0xcb   : > { %348 = vst.msk [vmem:[#allocation2 + $0x88] sm:$0xff] %vm330_vm1, %v287_v16  ;;  %347 = vst.msk [vmem:[#allocation2 + $0x80] sm:$0xff] %vm330_vm1, %v284_v17 }
  0xce   : > { %v293_v18 = vpop.xlane.xlu1 %292  ;;  %v290_v19 = vpop.xlane.xlu0 %289 }
  0xcf   : > { %350 = vst.msk [vmem:[#allocation2 + $0x98] sm:$0xff] %vm330_vm1, %v293_v18  ;;  %349 = vst.msk [vmem:[#allocation2 + $0x90] sm:$0xff] %vm330_vm1, %v290_v19 }
  0xd2   : > { %v299_v20 = vpop.xlane.xlu1 %298  ;;  %v296_v21 = vpop.xlane.xlu0 %295 }
  0xd3   : > { %352 = vst.msk [vmem:[#allocation2 + $0xa8] sm:$0xff] %vm330_vm1, %v299_v20  ;;  %351 = vst.msk [vmem:[#allocation2 + $0xa0] sm:$0xff] %vm330_vm1, %v296_v21 }
  0xd6   : > { %v305_v22 = vpop.xlane.xlu1 %304  ;;  %v302_v23 = vpop.xlane.xlu0 %301 }
  0xd7   : > { %354 = vst.msk [vmem:[#allocation2 + $0xb8] sm:$0xff] %vm330_vm1, %v305_v22  ;;  %353 = vst.msk [vmem:[#allocation2 + $0xb0] sm:$0xff] %vm330_vm1, %v302_v23 }
  0xda   : > { %v311_v24 = vpop.xlane.xlu1 %310  ;;  %v308_v25 = vpop.xlane.xlu0 %307 }
  0xdb   : > { %356 = vst.msk [vmem:[#allocation2 + $0xc8] sm:$0xff] %vm330_vm1, %v311_v24  ;;  %355 = vst.msk [vmem:[#allocation2 + $0xc0] sm:$0xff] %vm330_vm1, %v308_v25 }
  0xde   : > { %v317_v26 = vpop.xlane.xlu1 %316  ;;  %v314_v27 = vpop.xlane.xlu0 %313 }
  0xdf   : > { %358 = vst.msk [vmem:[#allocation2 + $0xd8] sm:$0xff] %vm330_vm1, %v317_v26  ;;  %357 = vst.msk [vmem:[#allocation2 + $0xd0] sm:$0xff] %vm330_vm1, %v314_v27 }
  0xe2   : > { %v323_v28 = vpop.xlane.xlu1 %322  ;;  %v320_v29 = vpop.xlane.xlu0 %319 }
  0xe3   : > { %360 = vst.msk [vmem:[#allocation2 + $0xe8] sm:$0xff] %vm330_vm1, %v323_v28  ;;  %359 = vst.msk [vmem:[#allocation2 + $0xe0] sm:$0xff] %vm330_vm1, %v320_v29 }
  0xe6   : > { %v329_v30 = vpop.xlane.xlu1 %328  ;;  %v326_v31 = vpop.xlane.xlu0 %325 }
  0xe7   : > { %362 = vst.msk [vmem:[#allocation2 + $0xf8] sm:$0xff] %vm330_vm1, %v329_v30  ;;  %361 = vst.msk [vmem:[#allocation2 + $0xf0] sm:$0xff] %vm330_vm1, %v326_v31 }
  0xe8 PF: > { %v497_v32 = vld [vmem:[#allocation2] sm:$0xff]  ;;  %v498_v34 = vld [vmem:[#allocation2 + $0x8] sm:$0xff]  ;;  %v363_v35 = vlaneseq  ;;  %v499_v40 = vld [vmem:[#allocation2 + $0x10] sm:$0xff]  ;;  %v1075_v56 = vmov 1.0   ;;  %s663_s29 = sld [smem:[#allocation3]]  ;;  %s832_s30 = sshll.u32 %s1061_s18, 1 }
  0xe9   : > { %v513_v33 = vld [vmem:[#allocation2 + $0x80] sm:$0xff]  ;;  %v514_v37 = vld [vmem:[#allocation2 + $0x88] sm:$0xff]  ;;  %v515_v41 = vld [vmem:[#allocation2 + $0x90] sm:$0xff]  ;;  %s678_s6 = sadd.s32 %s1057_s17, %s832_s30  ;;  %s682_s8 = sshll.u32 %s1189_s22, 4  ;;  %s683_s8 = int_to_ptr.vmem [resolvable:$true] %s682_s8 }
  0xea   : > { %v944_v36 = vpack.i.bf16 %v497_v32, %v513_v33  ;;  %v946_v38 = vpack.i.bf16 %v498_v34, %v514_v37  ;;  %v1288_v39 = vshrl.u32 %v363_v35, 7  ;;  %v948_v42 = vpack.i.bf16 %v499_v40, %v515_v41  ;;  %v500_v43 = vld [vmem:[#allocation2 + $0x18] sm:$0xff]  ;;  %v1300_v51 = vld [vmem:[%s196_s2] ss:$0 sm:$0xff]  ;;  %v502_v62 = vld [vmem:[#allocation2 + $0x28] sm:$0xff]  ;;  %s833_s7 = sshll.u32 %s678_s6, 4 }
  0xeb   : > { %v516_v44 = vld [vmem:[#allocation2 + $0x98] sm:$0xff]  ;;  %v501_v54 = vld [vmem:[#allocation2 + $0x20] sm:$0xff]  ;;  %v518_v63 = vld [vmem:[#allocation2 + $0xa8] sm:$0xff]  ;;  %s680_s11 = scalar_lea.hbm %s1445_s3, %s833_s7  ;;  %s668_s12 = scalar_lea.sflag [#allocation5], %s187_s5 }
  0xec   : > { %945 = vxpose.xlu0.b32.start [1/16] (narrow) %v944_v36, 8  ;;  %v395_v45 = vadd.s32 248, %v1288_v39  ;;  %v379_v46 = vadd.s32 120, %v1288_v39  ;;  %v394_v47 = vadd.s32 240, %v1288_v39  ;;  %v378_v48 = vadd.s32 112, %v1288_v39  ;;  %v517_v55 = vld [vmem:[#allocation2 + $0xa0] sm:$0xff] }
  0xed   : > { %v393_v49 = vadd.s32 232, %v1288_v39  ;;  %v950_v50 = vpack.i.bf16 %v500_v43, %v516_v44  ;;  %v377_v52 = vadd.s32 104, %v1288_v39  ;;  %v392_v53 = vadd.s32 224, %v1288_v39  ;;  %v503_v5 = vld [vmem:[#allocation2 + $0x30] sm:$0xff]  ;;  %v504_v12 = vld [vmem:[#allocation2 + $0x38] sm:$0xff]  ;;  %v505_v19 = vld [vmem:[#allocation2 + $0x40] sm:$0xff] }
  0xee   : > { %vm432_vm2 = vcmp.eq.s32.totalorder %v395_v45, %v1300_v51  ;;  %vm416_vm3 = vcmp.eq.s32.totalorder %v379_v46, %v1300_v51  ;;  %vm431_vm4 = vcmp.eq.s32.totalorder %v394_v47, %v1300_v51  ;;  %vm415_vm5 = vcmp.eq.s32.totalorder %v378_v48, %v1300_v51  ;;  %v519_v6 = vld [vmem:[#allocation2 + $0xb0] sm:$0xff]  ;;  %v520_v13 = vld [vmem:[#allocation2 + $0xb8] sm:$0xff]  ;;  %v521_v20 = vld [vmem:[#allocation2 + $0xc0] sm:$0xff]  ;;  %s981_s13 = scalar_lea.vmem %s683_s8, 16  ;;  %s1076_s17 = smov [#allocation4]  }
  0xef   : > { %837 = vmatprep.subr.msk.mxu0 %vm432_vm2, %v1075_v56  ;;  %v376_v57 = vadd.s32 96, %v1288_v39  ;;  %vm430_vm6 = vcmp.eq.s32.totalorder %v393_v49, %v1300_v51  ;;  %v391_v58 = vadd.s32 216, %v1288_v39  ;;  %vm414_vm7 = vcmp.eq.s32.totalorder %v377_v52, %v1300_v51  ;;  %v506_v26 = vld [vmem:[#allocation2 + $0x48] sm:$0xff]  ;;  %v507_v33 = vld [vmem:[#allocation2 + $0x50] sm:$0xff]  ;;  %v508_v36 = vld [vmem:[#allocation2 + $0x58] sm:$0xff]  ;;  %p982_p1 = scmp.ne.s32.totalorder %s683_s8, %s981_s13  ;;  %s985_s18 = sshll.u32 %s1076_s17, 4  ;;  %s986_s18 = int_to_ptr.vmem [resolvable:$false] %s985_s18 }
  0xf0   : > { %947 = vxpose.xlu0.b32.cont [2/16] (narrow) %v946_v38, 8  ;;  %838 = vmatpush3.msk.msra.mxu0 %vm416_vm3, %v1075_v56  ;;  %v375_v59 = vadd.s32 88, %v1288_v39  ;;  %v952_v60 = vpack.i.bf16 %v501_v54, %v517_v55  ;;  %vm429_vm8 = vcmp.eq.s32.totalorder %v392_v53, %v1300_v51  ;;  %v390_v61 = vadd.s32 208, %v1288_v39  ;;  %v522_v27 = vld [vmem:[#allocation2 + $0xc8] sm:$0xff]  ;;  %v523_v34 = vld [vmem:[#allocation2 + $0xd0] sm:$0xff]  ;;  %v524_v37 = vld [vmem:[#allocation2 + $0xd8] sm:$0xff]  ;;  %p988_p5 = scmp.lt.s32.totalorder %s683_s8, %s986_s18 }
  0xf1   : > { %839 = vmatprep.subr.msk.mxu0 %vm431_vm4, %v1075_v56  ;;  %vm413_vm9 = vcmp.eq.s32.totalorder %v376_v57, %v1300_v51  ;;  %v374_v0 = vadd.s32 80, %v1288_v39  ;;  %vm428_vm10 = vcmp.eq.s32.totalorder %v391_v58, %v1300_v51  ;;  %v389_v1 = vadd.s32 200, %v1288_v39  ;;  %v509_v40 = vld [vmem:[#allocation2 + $0x60] sm:$0xff]  ;;  %v510_v43 = vld [vmem:[#allocation2 + $0x68] sm:$0xff]  ;;  %v511_v46 = vld [vmem:[#allocation2 + $0x70] sm:$0xff]  ;;  %p983_p2 = pnand %p982_p1, %p1151_p3  ;;  %s987_s2 = scalar_lea.vmem %s986_s18, 32 }
  0xf2   : > { %840 = vmatpush3.msk.msra.mxu0 %vm415_vm5, %v1075_v56  ;;  %vm412_vm11 = vcmp.eq.s32.totalorder %v375_v59, %v1300_v51  ;;  %v373_v2 = vadd.s32 72, %v1288_v39  ;;  %v954_v3 = vpack.i.bf16 %v502_v62, %v518_v63  ;;  %vm427_vm12 = vcmp.eq.s32.totalorder %v390_v61, %v1300_v51  ;;  %v525_v41 = vld [vmem:[#allocation2 + $0xe0] sm:$0xff]  ;;  %v526_v44 = vld [vmem:[#allocation2 + $0xe8] sm:$0xff]  ;;  %v512_v48 = vld [vmem:[#allocation2 + $0x78] sm:$0xff]  ;;  %p989_p6 = scmp.lt.s32.totalorder %s987_s2, %s981_s13 }
  0xf3   : > { %841 = vmatprep.subr.msk.mxu0 %vm430_vm6, %v1075_v56  ;;  %v388_v4 = vadd.s32 192, %v1288_v39  ;;  %vm411_vm13 = vcmp.eq.s32.totalorder %v374_v0, %v1300_v51  ;;  %v372_v7 = vadd.s32 64, %v1288_v39  ;;  %vm426_vm14 = vcmp.eq.s32.totalorder %v389_v1, %v1300_v51  ;;  %v528_v49 = vld [vmem:[#allocation2 + $0xf8] sm:$0xff]  ;;  %p984_p4 = pneg %p983_p2 }
  0xf4   : > { %949 = vxpose.xlu0.b32.cont [3/16] (narrow) %v948_v42, 8  ;;  %842 = vmatpush3.msk.msra.mxu0 %vm414_vm7, %v1075_v56  ;;  %v387_v8 = vadd.s32 184, %v1288_v39  ;;  %vm410_vm15 = vcmp.eq.s32.totalorder %v373_v2, %v1300_v51  ;;  %v371_v9 = vadd.s32 56, %v1288_v39  ;;  %v956_v10 = vpack.i.bf16 %v503_v5, %v519_v6  ;;  %p990_p7 = por %p989_p6, %p988_p5 }
  0xf5   : > { %843 = vmatprep.subr.msk.mxu0 %vm429_vm8, %v1075_v56  ;;  %vm425_vm0 = vcmp.eq.s32.totalorder %v388_v4, %v1300_v51  ;;  %v386_v11 = vadd.s32 176, %v1288_v39  ;;  %vm409_vm1 = vcmp.eq.s32.totalorder %v372_v7, %v1300_v51  ;;  %v370_v14 = vadd.s32 48, %v1288_v39 }
  0xf6   : > { %844 = vmatpush3.msk.msra.mxu0 %vm413_vm9, %v1075_v56  ;;  %vm424_vm2 = vcmp.eq.s32.totalorder %v387_v8, %v1300_v51  ;;  %v385_v15 = vadd.s32 168, %v1288_v39  ;;  %vm408_vm3 = vcmp.eq.s32.totalorder %v371_v9, %v1300_v51  ;;  %v369_v16 = vadd.s32 40, %v1288_v39  ;;  %p991_p9 = pnand %p990_p7, %p984_p4 }
  0xf7   : > { %845 = vmatprep.subr.msk.mxu0 %vm428_vm10, %v1075_v56  ;;  %v958_v17 = vpack.i.bf16 %v504_v12, %v520_v13  ;;  %vm423_vm4 = vcmp.eq.s32.totalorder %v386_v11, %v1300_v51  ;;  %v384_v18 = vadd.s32 160, %v1288_v39  ;;  %vm407_vm5 = vcmp.eq.s32.totalorder %v370_v14, %v1300_v51 }
  0xf8   : > { %951 = vxpose.xlu0.b32.cont [4/16] (narrow) %v950_v50, 8  ;;  %846 = vmatpush3.msk.msra.mxu0 %vm412_vm11, %v1075_v56  ;;  %v368_v21 = vadd.s32 32, %v1288_v39  ;;  %vm422_vm6 = vcmp.eq.s32.totalorder %v385_v15, %v1300_v51  ;;  %v383_v22 = vadd.s32 152, %v1288_v39  ;;  %vm406_vm7 = vcmp.eq.s32.totalorder %v369_v16, %v1300_v51 }
  0xf9   : > { %847 = vmatprep.subr.msk.mxu0 %vm427_vm12, %v1075_v56  ;;  %v367_v23 = vadd.s32 24, %v1288_v39  ;;  %v960_v24 = vpack.i.bf16 %v505_v19, %v521_v20  ;;  %vm421_vm8 = vcmp.eq.s32.totalorder %v384_v18, %v1300_v51  ;;  %v382_v25 = vadd.s32 144, %v1288_v39 }
  0xfa   : > { %848 = vmatpush3.msk.msra.mxu0 %vm411_vm13, %v1075_v56  ;;  %vm405_vm9 = vcmp.eq.s32.totalorder %v368_v21, %v1300_v51  ;;  %v366_v28 = vadd.s32 16, %v1288_v39  ;;  %vm420_vm10 = vcmp.eq.s32.totalorder %v383_v22, %v1300_v51  ;;  %v381_v29 = vadd.s32 136, %v1288_v39 }
  0xfb   : > { %849 = vmatprep.subr.msk.mxu0 %vm426_vm14, %v1075_v56  ;;  %vm404_vm11 = vcmp.eq.s32.totalorder %v367_v23, %v1300_v51  ;;  %v365_v30 = vadd.s32 8, %v1288_v39  ;;  %v962_v31 = vpack.i.bf16 %v506_v26, %v522_v27  ;;  %vm419_vm12 = vcmp.eq.s32.totalorder %v382_v25, %v1300_v51 }
  0xfc   : > { %953 = vxpose.xlu0.b32.cont [5/16] (narrow) %v952_v60, 8  ;;  %850 = vmatpush3.msk.msra.mxu0 %vm410_vm15, %v1075_v56  ;;  %v380_v32 = vadd.s32 128, %v1288_v39  ;;  %vm403_vm13 = vcmp.eq.s32.totalorder %v366_v28, %v1300_v51  ;;  %vm418_vm14 = vcmp.eq.s32.totalorder %v381_v29, %v1300_v51  ;;  %v964_v35 = vpack.i.bf16 %v507_v33, %v523_v34 }
  0xfd   : > { %851 = vmatprep.subr.msk.mxu0 %vm425_vm0, %v1075_v56  ;;  %vm402_vm15 = vcmp.eq.s32.totalorder %v365_v30, %v1300_v51  ;;  %v966_v38 = vpack.i.bf16 %v508_v36, %v524_v37  ;;  %v968_v42 = vpack.i.bf16 %v509_v40, %v525_v41  ;;  %v970_v45 = vpack.i.bf16 %v510_v43, %v526_v44 }
  0xfe   : > { %852 = vmatpush3.msk.msra.mxu0 %vm409_vm1, %v1075_v56  ;;  %vm417_vm0 = vcmp.eq.s32.totalorder %v380_v32, %v1300_v51  ;;  %vm401_vm1 = vcmp.eq.s32.totalorder %v1288_v39, %v1300_v51  ;;  %v527_v39 = vld [vmem:[#allocation2 + $0xf0] sm:$0xff]  ;;  %v974_v50 = vpack.i.bf16 %v512_v48, %v528_v49 }
  0xff   : > { %853 = vmatprep.subr.msk.mxu0 %vm424_vm2, %v1075_v56  ;;  %v972_v47 = vpack.i.bf16 %v511_v46, %v527_v39 }
 0x100   : > { %955 = vxpose.xlu0.b32.cont [6/16] (narrow) %v954_v3, 8  ;;  %854 = vmatpush3.msk.msra.mxu0 %vm408_vm3, %v1075_v56 }
 0x101   : > { %855 = vmatprep.subr.msk.mxu0 %vm423_vm4, %v1075_v56 }
 0x102   : > { %856 = vmatpush3.msk.msra.mxu0 %vm407_vm5, %v1075_v56 }
 0x103   : > { %857 = vmatprep.subr.msk.mxu0 %vm422_vm6, %v1075_v56 }
 0x104   : > { %957 = vxpose.xlu0.b32.cont [7/16] (narrow) %v956_v10, 8  ;;  %858 = vmatpush3.msk.msra.mxu0 %vm406_vm7, %v1075_v56 }
 0x105   : > { %859 = vmatprep.subr.msk.mxu0 %vm421_vm8, %v1075_v56 }
 0x106   : > { %860 = vmatpush3.msk.msra.mxu0 %vm405_vm9, %v1075_v56 }
 0x107   : > { %861 = vmatprep.subr.msk.mxu0 %vm420_vm10, %v1075_v56 }
 0x108   : > { %959 = vxpose.xlu0.b32.cont [8/16] (narrow) %v958_v17, 8  ;;  %862 = vmatpush3.msk.msra.mxu0 %vm404_vm11, %v1075_v56 }
 0x109   : > { %863 = vmatprep.subr.msk.mxu0 %vm419_vm12, %v1075_v56 }
 0x10a   : > { %864 = vmatpush3.msk.msra.mxu0 %vm403_vm13, %v1075_v56 }
 0x10b   : > { %865 = vmatprep.subr.msk.mxu0 %vm418_vm14, %v1075_v56 }
 0x10c   : > { %961 = vxpose.xlu0.b32.cont [9/16] (narrow) %v960_v24, 8  ;;  %866 = vmatpush3.msk.msra.mxu0 %vm402_vm15, %v1075_v56 }
 0x10d   : > { %867 = vmatprep.subr.msk.mxu0 %vm417_vm0, %v1075_v56 }
 0x10e   : > { %868 = vmatpush3.msk.msra.mxu0 %vm401_vm1, %v1075_v56  ;;  %v664_v56 = vstv %s663_s29 }
 0x110   : > { %963 = vxpose.xlu0.b32.cont [10/16] (narrow) %v962_v31, 8 }
 0x114   : > { %965 = vxpose.xlu0.b32.cont [11/16] (narrow) %v964_v35, 8 }
 0x118   : > { %967 = vxpose.xlu0.b32.cont [12/16] (narrow) %v966_v38, 8 }
 0x11c   : > { %969 = vxpose.xlu0.b32.cont [13/16] (narrow) %v968_v42, 8 }
 0x120   : > { %971 = vxpose.xlu0.b32.cont [14/16] (narrow) %v970_v45, 8 }
 0x124   : > { %973 = vxpose.xlu0.b32.cont [15/16] (narrow) %v972_v47, 8 }
 0x128   : > { %975 = vxpose.xlu0.b32.end [16/16] (narrow) %v974_v50, 8 }
 0x168   : > { %v976_v51 = vpop.trf.xlu0 }
 0x169   : > { %v980_v52 = vunpack.i.h.bf16 %v976_v51  ;;  %v977_v53 = vunpack.i.l.bf16 %v976_v51 }
 0x16b   : > { %657 = vmatprep.mubr.f32.mxu0 %v977_v53 }
 0x16c   : > { %658 = vmatmul.mubr.f32.vlgmr.msra.gmra.mxu0 %v980_v52 }
 0x22c   : > { %v869_v54 = vpop.f32.mrf.mxu0 }
 0x22e   : > { %v870_v55 = vpop.f32.mrf.mxu0 }
 0x22f   : > { %v871_v57 = vadd.f32 %v870_v55, %v869_v54 }
 0x231   : > { %v665_v58 = vmul.f32 %v871_v57, %v664_v56 }
 0x233   : > { %666 = vst [vmem:[%s1189_s22] sm:$0x1] %v665_v58 }
 0x234   : > { %994 = shalt.err (!%p991_p9)
}
 0x235   : > { %s995_s25 = scalar_lea.hbm %s680_s11, 16  ;;  %s999_s28 = scalar_lea.hbm %s1445_s3, 64 }
 0x236   : > { %p996_p10 = scmp.ne.s32.totalorder %s680_s11, %s995_s25  ;;  %p1000_p13 = scmp.lt.s32.totalorder %s680_s11, %s1445_s3 }
 0x237   : > { %p1001_p0 = scmp.lt.s32.totalorder %s999_s28, %s995_s25 }
 0x238   : > { %p997_p11 = pnand %p996_p10, %p1151_p3 }
 0x239   : > { %p1002_p1 = por %p1001_p0, %p1000_p13 }
 0x23a   : > { %p998_p12 = pneg %p997_p11 }
 0x23c   : > { %p1003_p2 = pnand %p1002_p1, %p998_p12 }
 0x23e   : > { %1006 = shalt.err (!%p1003_p2)
}
 0x23f   : > { %872 = dma.vmem_to_hbm [thread:$0]  (%p1151_p3), %s683_s8, 16, %s680_s11, %s668_s12  }
 0x240 PF: > { %p878_p4 = scmp.ge.s32.totalorder %s1073_s21, 2  ;;  %s694_s6 = sand.u32 1, %s1045_s14  }
 0x241   : > { %s695_s7 = scalar_lea.sflag [#allocation5], %s694_s6 }
 0x242   : > { %p875_p5 = pnand %p878_p4, %p1160_p8 }
 0x244   : > { %p876_p6 = pneg %p875_p5 }
 0x246   : > { %1040 = dma.done.wait (%p876_p6), %s695_s7, 16  }
 0x247   : > { %1042 = vsyncadd (%p876_p6), %s695_s7, 4294967280  ;;  %s17_s21 = sadd.s32 1, %s1073_s21   ;;  %s1448_s14 = smov %s1049_s15 }
 0x248   : > { %p14_p7 = scmp.ge.s32.totalorder %s17_s21, 6   ;;  %s1449_s15 = smov %s1053_s16 }
 0x249   : > { %s1450_s16 = smov %s1169_s4  ;;  %s1451_s17 = smov %s1065_s19 }
 0x24a   : > { %s1452_s18 = smov %s1069_s20  ;;  %s1453_s19 = smov %s1456_s23 }
 0x24b   : > { %s1454_s20 = smov %s1460_s24  ;;  %16 = sbr.rel (!%p14_p7) target bundleno = 7 (0x7), region = 74 }
 0x250   :  { %699 = vsyncpa [#allocation5], 1 }
 0x251   :  { %701 = vsyncpa [#allocation5 + $0x1], 1 }

</bundles_post_ra>
